<compile_context>
chip_gen: v7x
topology: tpu7x:2x2x1
jax: 0.10.0
libtpu: 0.0.40
codegen_flags: <defaults>
</compile_context>

<pallas_src>
import functools

import jax
import jax.numpy as jnp
from jax import lax
from jax.experimental import pallas as pl
from jax.experimental.pallas import tpu as pltpu


def _round_up(x, m):
    return ((x + m - 1) // m) * m


def _ce_loss_kernel(logits_ref, labels_ref, out_ref, acc_loss_ref, acc_cnt_ref,
                    *, hw, num_classes, tile_hw, tiles_per_split,
                    ignore_index, needs_tail_mask):
    """Per-(image, pixel-split) cross-entropy partial sums.

    logits_ref: (1, C, tile_hw)  logits block (classes on sublanes, pixels on lanes)
    labels_ref: (1, 1, tile_hw)  int32 labels block
    out_ref:    (1, 1, 128)      f32; lane 0 = loss sum, lane 1 = valid count
    acc_*_ref:  (1, tile_hw)     f32 lane-wise accumulators (persist across tiles)
    """
    s = pl.program_id(1)
    t = pl.program_id(2)
    nt = pl.num_programs(2)

    @pl.when(t == 0)
    def _():
        acc_loss_ref[...] = jnp.zeros_like(acc_loss_ref)
        acc_cnt_ref[...] = jnp.zeros_like(acc_cnt_ref)

    x = logits_ref[0]                        # (C, tile_hw), native dtype (f32 or bf16)
    lbl = labels_ref[0]                      # (1, tile_hw) int32

    # numerically-stable log-sum-exp over the class (sublane) axis.
    # max / subtract stay in the native dtype (bf16 halves VALU work on v6e/v7x,
    # and still lowers correctly on v5e); exp/log and accumulation are f32.
    m = jnp.max(x, axis=0, keepdims=True)                               # (1, tile_hw)
    e = jnp.exp((x - m).astype(jnp.float32))                            # (C, tile_hw) f32
    lse = m.astype(jnp.float32) + jnp.log(
        jnp.sum(e, axis=0, keepdims=True))                              # (1, tile_hw) f32

    # target-class logit via a select-sum (no dynamic gather on TPU, no
    # onehot convert + multiply).  class_ids is a (C, 1) iota; compare broadcasts.
    class_ids = lax.broadcasted_iota(jnp.int32, (num_classes, 1), 0)
    tgt = jnp.sum(jnp.where(class_ids == lbl, x, 0.0),
                  axis=0, keepdims=True).astype(jnp.float32)            # (1, tile_hw)

    nll = lse - tgt                                                     # (1, tile_hw)

    # validity: in-range label.  The ignore_index compare is emitted only when
    # ignore_index lies inside [0, C); the torchvision defaults (-100 / 255)
    # are already excluded by the range check.
    valid = (lbl >= 0) & (lbl < num_classes)
    if 0 <= ignore_index < num_classes:      # static: only emit when needed
        valid &= lbl != ignore_index
    if needs_tail_mask:                      # static: ragged tail / clamped dup tiles
        g = s * tiles_per_split + t          # global tile index (unclamped)
        pix = lax.broadcasted_iota(jnp.int32, (1, tile_hw), 1) + g * tile_hw
        valid &= pix < hw

    acc_loss_ref[...] += jnp.where(valid, nll, 0.0)
    acc_cnt_ref[...] += valid.astype(jnp.float32)

    @pl.when(t == nt - 1)
    def _():
        loss_sum = jnp.sum(acc_loss_ref[...])   # one full reduce per (image, split)
        cnt_sum = jnp.sum(acc_cnt_ref[...])
        lane = lax.broadcasted_iota(jnp.int32, (1, 1, 128), 2)
        out_ref[...] = jnp.where(lane == 0, loss_sum,
                                 jnp.where(lane == 1, cnt_sum, 0.0))


def segmentation_cross_entropy_loss(logits_nchw, labels_nhw, *,
                                    ignore_index=-100, tile_hw=8192,
                                    pixel_splits=2):
    """CrossEntropyLoss(x['out'], y), reduction='mean' over non-ignored pixels.

    logits_nchw: [N, C, H, W] float (f32 or bf16; bf16 is loaded as bf16)
    labels_nhw:  [N, H, W]    integer class ids
    returns:     scalar float32 mean loss
    """
    n, c, h, w = logits_nchw.shape
    hw = h * w

    # lane-multiple tile, no larger than the (rounded-up) image size
    tile_hw = min(_round_up(tile_hw, 128), _round_up(hw, 128))
    num_tiles_total = pl.cdiv(hw, tile_hw)

    # pixel-split parallel axis (keeps both v7x TensorCores busy at small N)
    n_splits = max(1, min(pixel_splits, num_tiles_total))
    tiles_per_split = pl.cdiv(num_tiles_total, n_splits)
    needs_clamp = n_splits * tiles_per_split > num_tiles_total
    needs_tail_mask = needs_clamp or (hw % tile_hw != 0)

    # free reshapes: NCHW -> [N, C, HW]; labels -> [N, 1, HW]
    logits = logits_nchw.reshape(n, c, hw)
    labels = labels_nhw.reshape(n, 1, hw).astype(jnp.int32)

    def _tile_index(s, t):
        g = s * tiles_per_split + t
        if needs_clamp:
            # duplicated tail tiles read the last real tile; their pixels are
            # masked in-kernel via the *unclamped* global pixel offset.
            g = jnp.minimum(g, num_tiles_total - 1)
        return g

    kernel = functools.partial(
        _ce_loss_kernel, hw=hw, num_classes=c, tile_hw=tile_hw,
        tiles_per_split=tiles_per_split, ignore_index=ignore_index,
        needs_tail_mask=needs_tail_mask)

    logit_bytes = jnp.dtype(logits_nchw.dtype).itemsize
    cost = pl.CostEstimate(
        flops=6 * n * hw * c,
        transcendentals=n * hw * (c + 1),
        bytes_accessed=n * hw * c * logit_bytes + n * hw * 4
        + n * n_splits * 128 * 4,
    )

    partials = pl.pallas_call(
        kernel,
        out_shape=jax.ShapeDtypeStruct((n * n_splits, 1, 128), jnp.float32),
        grid_spec=pltpu.PrefetchScalarGridSpec(
            num_scalar_prefetch=0,
            grid=(n, n_splits, tiles_per_split),
            in_specs=[
                pl.BlockSpec((1, c, tile_hw),
                             lambda b, s, t: (b, 0, _tile_index(s, t))),
                pl.BlockSpec((1, 1, tile_hw),
                             lambda b, s, t: (b, 0, _tile_index(s, t))),
            ],
            out_specs=pl.BlockSpec((1, 1, 128),
                                   lambda b, s, t: (b * n_splits + s, 0, 0)),
            scratch_shapes=[
                pltpu.VMEM((1, tile_hw), jnp.float32),   # lane-wise loss sums
                pltpu.VMEM((1, tile_hw), jnp.float32),   # lane-wise valid counts
            ],
        ),
        compiler_params=pltpu.CompilerParams(
            # batch and pixel-split axes shard across TensorCores (v7x megacore)
            dimension_semantics=("parallel", "parallel", "arbitrary"),
            vmem_limit_bytes=32 * 1024 * 1024,
        ),
        cost_estimate=cost,
    )(logits, labels)

    loss_sum = jnp.sum(partials[:, 0, 0])
    valid_cnt = jnp.sum(partials[:, 0, 1])
    return (loss_sum / valid_cnt).astype(jnp.float32)


def segmentation_loss_wrapper_forward(x_dict, y, *, ignore_index=-100):
    """Mirror of SegmentationLossWrapper.forward: loss_fn(x['out'], y)."""
    return segmentation_cross_entropy_loss(x_dict["out"], y, ignore_index=ignore_index)


def _reference_loss(logits_nchw, labels_nhw, ignore_index=-100):
    """Plain-JAX reference (torch.nn.CrossEntropyLoss, reduction='mean')."""
    n, c, h, w = logits_nchw.shape
    logits = jnp.transpose(logits_nchw, (0, 2, 3, 1)).reshape(-1, c).astype(jnp.float32)
    labels = labels_nhw.reshape(-1)
    valid = (labels >= 0) & (labels < c) & (labels != ignore_index)
    safe = jnp.where(valid, labels, 0)
    logp = jax.nn.log_softmax(logits, axis=-1)
    nll = -jnp.take_along_axis(logp, safe[:, None], axis=-1)[:, 0]
    return jnp.sum(jnp.where(valid, nll, 0.0)) / jnp.sum(valid.astype(jnp.float32))


if __name__ == "__main__":
    key = jax.random.PRNGKey(0)
    k1, k2, k3, k4, k5 = jax.random.split(key, 5)

    N, C, H, W = 2, 4, 16, 16  # small segmentation-style shapes
    logits = jax.random.normal(k1, (N, C, H, W), dtype=jnp.float32)
    labels = jax.random.randint(k2, (N, H, W), 0, C, dtype=jnp.int32)

    # 1) standard case: all labels valid, f32 logits
    loss = jax.block_until_ready(segmentation_loss_wrapper_forward({"out": logits}, labels))
    ref = jax.block_until_ready(_reference_loss(logits, labels))
    assert jnp.allclose(loss, ref, rtol=1e-5, atol=1e-5), (loss, ref)

    # 2) ignore_index=255 ("void" pixels, torchvision-style)
    void_mask = jax.random.bernoulli(k3, 0.2, (N, H, W))
    labels_ig = jnp.where(void_mask, 255, labels).astype(jnp.int32)
    loss_ig = jax.block_until_ready(
        segmentation_cross_entropy_loss(logits, labels_ig, ignore_index=255))
    ref_ig = jax.block_until_ready(_reference_loss(logits, labels_ig, ignore_index=255))
    assert jnp.allclose(loss_ig, ref_ig, rtol=1e-5, atol=1e-5), (loss_ig, ref_ig)

    # 3) bf16 logits loaded directly; max/sub/select in bf16, exp/log/acc in f32
    logits_bf16 = logits.astype(jnp.bfloat16)
    loss_bf = jax.block_until_ready(
        segmentation_cross_entropy_loss(logits_bf16, labels))
    ref_bf = jax.block_until_ready(
        _reference_loss(logits_bf16.astype(jnp.float32), labels))
    assert jnp.allclose(loss_bf, ref_bf, rtol=1e-2, atol=1e-2), (loss_bf, ref_bf)

    # 4) multi-tile + pixel-split + ragged tail + clamped duplicate tiles
    H2, W2 = 48, 48     # hw=2304, tile=512 -> 5 tiles, 2 splits -> 3 per split
    logits2 = jax.random.normal(k4, (N, C, H2, W2), dtype=jnp.float32)
    labels2 = jax.random.randint(k5, (N, H2, W2), 0, C, dtype=jnp.int32)
    loss2 = jax.block_until_ready(
        segmentation_cross_entropy_loss(logits2, labels2, tile_hw=512))
    ref2 = jax.block_until_ready(_reference_loss(logits2, labels2))
    assert jnp.allclose(loss2, ref2, rtol=1e-5, atol=1e-5), (loss2, ref2)

    print("KERNEL_OK")
</pallas_src>

<mosaic_0001>
module attributes {stable_mosaic.version = 11 : i64} {
  func.func @_ce_loss_kernel(%arg0: i32, %arg1: i32, %arg2: i32, %arg3: memref<1x4x256xf32, #tpu.memory_space<vmem>>, %arg4: memref<1x1x256xi32, #tpu.memory_space<vmem>>, %arg5: memref<1x1x128xf32, #tpu.memory_space<vmem>>, %arg6: memref<1x256xf32, #tpu.memory_space<vmem>>, %arg7: memref<1x256xf32, #tpu.memory_space<vmem>>) attributes {dimension_semantics = [#tpu.dimension_semantics<parallel>, #tpu.dimension_semantics<parallel>, #tpu.dimension_semantics<arbitrary>], iteration_bounds = array<i64: 2, 1, 1>, scalar_prefetch = 0 : i64, scratch_operands = 2 : i64, tpu.core_type = #tpu.core_type<tc>, window_params = [{transform_indices = @transform_0, window_bounds = array<i64: 1, 4, 256>}, {transform_indices = @transform_1, window_bounds = array<i64: 1, 1, 256>}, {transform_indices = @transform_2, window_bounds = array<i64: 1, 1, 128>}]} {
    %c0_i32 = arith.constant 0 : i32
    %0 = arith.cmpi eq, %arg2, %c0_i32 : i32
    %1 = arith.extui %0 : i1 to i32
    %c0_i32_0 = arith.constant 0 : i32
    %2 = arith.cmpi ne, %1, %c0_i32_0 : i32
    scf.if %2 {
      %cst_21 = arith.constant 0.000000e+00 : f32
      %43 = vector.broadcast %cst_21 : f32 to vector<1x256xf32>
      %c0_22 = arith.constant 0 : index
      %c0_23 = arith.constant 0 : index
      %44 = vector.load %arg6[%c0_22, %c0_23] : memref<1x256xf32, #tpu.memory_space<vmem>>, vector<1x256xf32>
      tpu.vector_store %arg6[%c0_22, %c0_23], %43 {strides = array<i32>} : memref<1x256xf32, #tpu.memory_space<vmem>>, vector<1x256xf32>,
      %cst_24 = arith.constant 0.000000e+00 : f32
      %45 = vector.broadcast %cst_24 : f32 to vector<1x256xf32>
      %c0_25 = arith.constant 0 : index
      %c0_26 = arith.constant 0 : index
      %46 = vector.load %arg7[%c0_25, %c0_26] : memref<1x256xf32, #tpu.memory_space<vmem>>, vector<1x256xf32>
      tpu.vector_store %arg7[%c0_25, %c0_26], %45 {strides = array<i32>} : memref<1x256xf32, #tpu.memory_space<vmem>>, vector<1x256xf32>,
    } else {
    }
    %c0 = arith.constant 0 : index
    %c0_1 = arith.constant 0 : index
    %c0_2 = arith.constant 0 : index
    %3 = vector.load %arg3[%c0, %c0_1, %c0_2] : memref<1x4x256xf32, #tpu.memory_space<vmem>>, vector<1x4x256xf32>
    %4 = vector.shape_cast %3 : vector<1x4x256xf32> to vector<4x256xf32>
    %c0_3 = arith.constant 0 : index
    %c0_4 = arith.constant 0 : index
    %c0_5 = arith.constant 0 : index
    %5 = vector.load %arg4[%c0_3, %c0_4, %c0_5] : memref<1x1x256xi32, #tpu.memory_space<vmem>>, vector<1x1x256xi32>
    %6 = vector.shape_cast %5 : vector<1x1x256xi32> to vector<1x256xi32>
    %cst = arith.constant dense<0xFF800000> : vector<256xf32>
    %7 = vector.multi_reduction <maximumf>, %4, %cst [0] : vector<4x256xf32> to vector<256xf32>
    %8 = vector.shape_cast %7 : vector<256xf32> to vector<1x256xf32>
    %9 = vector.broadcast %8 : vector<1x256xf32> to vector<4x256xf32>
    %10 = arith.subf %4, %9 : vector<4x256xf32>
    %11 = math.exp %10 : vector<4x256xf32>
    %cst_6 = arith.constant dense<0.000000e+00> : vector<256xf32>
    %12 = vector.multi_reduction <add>, %11, %cst_6 [0] : vector<4x256xf32> to vector<256xf32>
    %13 = vector.shape_cast %12 : vector<256xf32> to vector<1x256xf32>
    %14 = math.log %13 : vector<1x256xf32>
    %15 = arith.addf %8, %14 : vector<1x256xf32>
    %16 = tpu.iota {dimensions = array<i32: 0>} : vector<4x1xi32>
    %17 = vector.broadcast %16 : vector<4x1xi32> to vector<4x256xi32>
    %18 = vector.broadcast %6 : vector<1x256xi32> to vector<4x256xi32>
    %19 = arith.cmpi eq, %17, %18 : vector<4x256xi32>
    %cst_7 = arith.constant 0.000000e+00 : f32
    %20 = vector.broadcast %cst_7 : f32 to vector<4x256xf32>
    %21 = arith.select %19, %4, %20 : vector<4x256xi1>, vector<4x256xf32>
    %cst_8 = arith.constant dense<0.000000e+00> : vector<256xf32>
    %22 = vector.multi_reduction <add>, %21, %cst_8 [0] : vector<4x256xf32> to vector<256xf32>
    %23 = vector.shape_cast %22 : vector<256xf32> to vector<1x256xf32>
    %24 = arith.subf %15, %23 : vector<1x256xf32>
    %c0_i32_9 = arith.constant 0 : i32
    %25 = vector.broadcast %c0_i32_9 : i32 to vector<1x256xi32>
    %26 = arith.cmpi sge, %6, %25 : vector<1x256xi32>
    %c4_i32 = arith.constant 4 : i32
    %27 = vector.broadcast %c4_i32 : i32 to vector<1x256xi32>
    %28 = arith.cmpi slt, %6, %27 : vector<1x256xi32>
    %29 = arith.andi %26, %28 : vector<1x256xi1>
    %c0_10 = arith.constant 0 : index
    %c0_11 = arith.constant 0 : index
    %30 = vector.load %arg6[%c0_10, %c0_11] : memref<1x256xf32, #tpu.memory_space<vmem>>, vector<1x256xf32>
    %cst_12 = arith.constant 0.000000e+00 : f32
    %31 = vector.broadcast %cst_12 : f32 to vector<1x256xf32>
    %32 = arith.select %29, %24, %31 : vector<1x256xi1>, vector<1x256xf32>
    %33 = arith.addf %30, %32 : vector<1x256xf32>
    %c0_13 = arith.constant 0 : index
    %c0_14 = arith.constant 0 : index
    %34 = vector.load %arg6[%c0_13, %c0_14] : memref<1x256xf32, #tpu.memory_space<vmem>>, vector<1x256xf32>
    tpu.vector_store %arg6[%c0_13, %c0_14], %33 {strides = array<i32>} : memref<1x256xf32, #tpu.memory_space<vmem>>, vector<1x256xf32>,
    %c0_15 = arith.constant 0 : index
    %c0_16 = arith.constant 0 : index
    %35 = vector.load %arg7[%c0_15, %c0_16] : memref<1x256xf32, #tpu.memory_space<vmem>>, vector<1x256xf32>
    %36 = arith.extui %29 : vector<1x256xi1> to vector<1x256xi32>
    %37 = arith.sitofp %36 : vector<1x256xi32> to vector<1x256xf32>
    %38 = arith.addf %35, %37 : vector<1x256xf32>
    %c0_17 = arith.constant 0 : index
    %c0_18 = arith.constant 0 : index
    %39 = vector.load %arg7[%c0_17, %c0_18] : memref<1x256xf32, #tpu.memory_space<vmem>>, vector<1x256xf32>
    tpu.vector_store %arg7[%c0_17, %c0_18], %38 {strides = array<i32>} : memref<1x256xf32, #tpu.memory_space<vmem>>, vector<1x256xf32>,
    %c0_i32_19 = arith.constant 0 : i32
    %40 = arith.cmpi eq, %arg2, %c0_i32_19 : i32
    %41 = arith.extui %40 : i1 to i32
    %c0_i32_20 = arith.constant 0 : i32
    %42 = arith.cmpi ne, %41, %c0_i32_20 : i32
    scf.if %42 {
      %c0_21 = arith.constant 0 : index
      %c0_22 = arith.constant 0 : index
      %43 = vector.load %arg6[%c0_21, %c0_22] : memref<1x256xf32, #tpu.memory_space<vmem>>, vector<1x256xf32>
      %44 = vector.shape_cast %43 : vector<1x256xf32> to vector<1x1x256xf32>
      %cst_23 = arith.constant dense<0.000000e+00> : vector<1xf32>
      %45 = vector.multi_reduction <add>, %44, %cst_23 [1, 2] : vector<1x1x256xf32> to vector<1xf32>
      %46 = vector.shape_cast %45 : vector<1xf32> to vector<1x1x1xf32>
      %47 = vector.extract %46[0, 0, 0] : f32 from vector<1x1x1xf32>
      %c0_24 = arith.constant 0 : index
      %c0_25 = arith.constant 0 : index
      %48 = vector.load %arg7[%c0_24, %c0_25] : memref<1x256xf32, #tpu.memory_space<vmem>>, vector<1x256xf32>
      %49 = vector.shape_cast %48 : vector<1x256xf32> to vector<1x1x256xf32>
      %cst_26 = arith.constant dense<0.000000e+00> : vector<1xf32>
      %50 = vector.multi_reduction <add>, %49, %cst_26 [1, 2] : vector<1x1x256xf32> to vector<1xf32>
      %51 = vector.shape_cast %50 : vector<1xf32> to vector<1x1x1xf32>
      %52 = vector.extract %51[0, 0, 0] : f32 from vector<1x1x1xf32>
      %53 = tpu.iota {dimensions = array<i32: 2>} : vector<1x1x128xi32>
      %c0_i32_27 = arith.constant 0 : i32
      %54 = vector.broadcast %c0_i32_27 : i32 to vector<1x1x128xi32>
      %55 = arith.cmpi eq, %53, %54 : vector<1x1x128xi32>
      %c1_i32 = arith.constant 1 : i32
      %56 = vector.broadcast %c1_i32 : i32 to vector<1x1x128xi32>
      %57 = arith.cmpi eq, %53, %56 : vector<1x1x128xi32>
      %cst_28 = arith.constant 0.000000e+00 : f32
      %58 = vector.broadcast %52 : f32 to vector<1x1x128xf32>
      %59 = vector.broadcast %cst_28 : f32 to vector<1x1x128xf32>
      %60 = arith.select %57, %58, %59 : vector<1x1x128xi1>, vector<1x1x128xf32>
      %61 = vector.broadcast %47 : f32 to vector<1x1x128xf32>
      %62 = arith.select %55, %61, %60 : vector<1x1x128xi1>, vector<1x1x128xf32>
      %c0_29 = arith.constant 0 : index
      %c0_30 = arith.constant 0 : index
      %c0_31 = arith.constant 0 : index
      %63 = vector.load %arg5[%c0_29, %c0_30, %c0_31] : memref<1x1x128xf32, #tpu.memory_space<vmem>>, vector<1x1x128xf32>
      tpu.vector_store %arg5[%c0_29, %c0_30, %c0_31], %62 {strides = array<i32>} : memref<1x1x128xf32, #tpu.memory_space<vmem>>, vector<1x1x128xf32>,
    } else {
    }
    return
  }
  func.func @transform_0(%arg0: i32, %arg1: i32, %arg2: i32) -> (i32, i32, i32) {
    %c1_i32 = arith.constant 1 : i32
    %0 = arith.muli %arg1, %c1_i32 : i32
    %1 = arith.addi %0, %arg2 : i32
    %c0_i32 = arith.constant 0 : i32
    %c0_i32_0 = arith.constant 0 : i32
    return %arg0, %c0_i32, %1 : i32, i32, i32
  }
  func.func @transform_1(%arg0: i32, %arg1: i32, %arg2: i32) -> (i32, i32, i32) {
    %c1_i32 = arith.constant 1 : i32
    %0 = arith.muli %arg1, %c1_i32 : i32
    %1 = arith.addi %0, %arg2 : i32
    %c0_i32 = arith.constant 0 : i32
    %c0_i32_0 = arith.constant 0 : i32
    return %arg0, %c0_i32, %1 : i32, i32, i32
  }
  func.func @transform_2(%arg0: i32, %arg1: i32, %arg2: i32) -> (i32, i32, i32) {
    %c1_i32 = arith.constant 1 : i32
    %0 = arith.muli %arg0, %c1_i32 : i32
    %1 = arith.addi %0, %arg1 : i32
    %c0_i32 = arith.constant 0 : i32
    %c0_i32_0 = arith.constant 0 : i32
    %c0_i32_1 = arith.constant 0 : i32
    return %1, %c0_i32, %c0_i32_0 : i32, i32, i32
  }
}

</mosaic_0001>

<bundles_post_ra>
// kernel: tpu_custom_call.1
= control target key start
LH: loop header
LB: loop body
LE: loop exit
PB: predicated region body
PF: predicated region fallthrough
CT: control target
= control target key end

     0   :  { %7 = vsyncpa [#allocation5], 0  ;;  %s1067_s0 = inlined_call_operand.hbm [shape: f32[2,4,256], index: 0, kind: input, shape index: {}]   ;;  %s1068_s1 = inlined_call_operand.hbm [shape: s32[2,1,256], index: 1, kind: input, shape index: {}]   ;;  %s1069_s2 = inlined_call_operand.hbm [shape: f32[2,1,128], index: 2, kind: output, shape index: {}]  }
   0x1   :  { %9 = vsyncpa [#allocation5 + $0x1], 0 }
   0x2   :  { %10 = vsyncpa [#allocation8], 0 }
   0x3   :  { %12 = vsyncpa [#allocation8 + $0x1], 0 }
   0x4   :  { %13 = vsyncpa [#allocation6], 0 }
   0x5   :  { %15 = vsyncpa [#allocation6 + $0x1], 0  ;;  %s812_s9 = smov 0   ;;  %s814_s10 = smov 0  }
   0x6   :  { %s816_s11 = smov 0   ;;  %s818_s12 = smov 0  }
   0x7   :  { %s820_s13 = smov 0   ;;  %s822_s14 = smov 0  }
   0x8 LB: > { %s545_s15 = sadd.s32 4294967295, %s790_s14   ;;  %s546_s16 = sadd.s32 4294967294, %s790_s14   ;;  %s790_s14 = sphi %s822_s14, %s21_s14   ;;  %s786_s13 = sphi %s820_s13, %s1093_s13   ;;  %s782_s12 = sphi %s818_s12, %s1092_s12   ;;  %s778_s11 = sphi %s816_s11, %s1091_s11   ;;  %s774_s10 = sphi %s814_s10, %s1090_s10   ;;  %s770_s9 = sphi %s812_s9, %s1089_s9  }
   0x9   : > { %s40_s17 = sadd.s32 1, %s786_s13  ;;  %s51_s18 = sadd.s32 1, %s778_s11 }
   0xa   : > { %p42_p0 = scmp.ge.s32.totalorder %s40_s17, 2  ;;  %p58_p1 = scmp.ne.s32.totalorder %s778_s11, %s774_s10 }
   0xb   : > { %p59_p2 = scmp.eq.s32.totalorder %s790_s14, 0  ;;  %p64_p3 = scmp.ne.s32.totalorder %s774_s10, %s770_s9 }
   0xc   : > { %s1095_s17 = smov (%p42_p0, %s40_s17), 0  ;;  %p65_p5 = scmp.eq.s32.totalorder %s545_s15, 0 }
   0xd   : > { %p853_p4 = por %p59_p2, %p58_p1  ;;  %s46_s20 = ssub.s32 %s786_s13, %s1095_s17 }
   0xe   : > { %p120_p6 = scmp.eq.s32.totalorder %s545_s15, 1  ;;  %p49_p7 = scmp.eq.s32.totalorder %s46_s20, 0 }
   0xf   : > { %p859_p8 = por %p65_p5, %p64_p3  ;;  %p126_p10 = scmp.eq.s32.totalorder %s546_s16, 1 }
  0x10   : > { %p863_p9 = por %p120_p6, %p58_p1  ;;  %p585_p13 = scmp.lt.s32.totalorder %s790_s14, 2 }
  0x11   : > { %s1073_s21 = scalar_select %p859_p8, 1, 0 }
  0x12   : > { %s1074_s22 = scalar_select %p863_p9, 1, 0 }
  0x13   : > { %s868_s23 = scalar_select %p49_p7, %s778_s11, %s51_s18  }
  0x14   : > { %p870_p11 = por %p126_p10, %p64_p3  ;;  %s877_s25 = sand.u32 1, %s778_s11  }
  0x15   : > { %s549_s26 = sshll.u32 %s877_s25, 3  ;;  %s562_s27 = sshll.u32 %s786_s13, 7 }
  0x16   : > { %s1075_s24 = scalar_select %p870_p11, 1, 0 }
  0x17   : > { %s884_s30 = scalar_lea.hbm %s1067_s0, %s562_s27  ;;  %s150_s3 = scalar_lea.vmem [#allocation4], %s549_s26 }
  0x18   : > { %s161_s4 = sshll.u32 %s150_s3, 4  ;;  %p890_p0 = pnand %p585_p13, %p853_p4  ;;  %s886_s4 = int_to_ptr.vmem [resolvable:$true] %s161_s4 }
  0x19   : > { %s147_s6 = scalar_lea.sflag [#allocation5], %s877_s25  ;;  %s644_s7 = scalar_lea.hbm %s884_s30, 128 }
  0x1a   : > { %p645_p3 = scmp.ne.s32.totalorder %s884_s30, %s644_s7  ;;  %p646_p5 = pneg %p890_p0 }
  0x1b   : > { %s649_s16 = scalar_lea.hbm %s1067_s0, 256  ;;  %p650_p4 = scmp.lt.u32.totalorder %s884_s30, %s1067_s0 }
  0x1c   : > { %p647_p6 = pnand %p646_p5, %p645_p3  ;;  %p651_p10 = scmp.lt.u32.totalorder %s649_s16, %s644_s7 }
  0x1d   : > { %p653_p12 = scmp.lt.u32.totalorder %s644_s7, %s884_s30 }
  0x1e   : > { %p648_p7 = pneg %p647_p6  ;;  %p652_p13 = por %p651_p10, %p650_p4 }
  0x20   : > { %p654_p1 = por %p653_p12, %p652_p13 }
  0x22   : > { %p655_p2 = pnand %p654_p1, %p648_p7 }
  0x24   : > { %658 = shalt.err (!%p655_p2)
}
  0x25   : > { %s659_s20 = scalar_lea.vmem %s886_s4, 128  ;;  %s792_s26 = smov [#allocation4]  }
  0x26   : > { %p660_p3 = scmp.ne.s32.totalorder %s886_s4, %s659_s20  ;;  %s664_s27 = sshll.u32 %s792_s26, 4  ;;  %s665_s27 = int_to_ptr.vmem [resolvable:$false] %s664_s27 }
  0x27   : > { %s666_s28 = scalar_lea.vmem %s665_s27, 256  ;;  %p667_p9 = scmp.lt.s32.totalorder %s886_s4, %s665_s27 }
  0x28   : > { %p662_p6 = pnand %p660_p3, %p646_p5  ;;  %p668_p4 = scmp.lt.s32.totalorder %s666_s28, %s659_s20 }
  0x2a   : > { %p663_p11 = pneg %p662_p6  ;;  %p669_p10 = por %p668_p4, %p667_p9 }
  0x2c   : > { %p670_p12 = pnand %p669_p10, %p663_p11 }
  0x2e   : > { %673 = shalt.err (!%p670_p12)
}
  0x2f   : > { %577 = dma.hbm_to_vmem [thread:$0]  (!%p890_p0), %s884_s30, 128, %s886_s4, %s147_s6  }
  0x30   : > { %p1077_p1 = scmp.lt.s32.totalorder %s790_s14, 3  ;;  %p1078_p2 = scmp.ge.s32.totalorder %s790_s14, 1 }
  0x31   : > { %s552_s3 = sshll.u32 %s877_s25, 1  ;;  %s563_s7 = sshll.u32 %s786_s13, 5 }
  0x32   : > { %p926_p7 = pnand %p1078_p2, %p1077_p1  ;;  %s935_s16 = scalar_lea.hbm %s1068_s1, %s563_s7 }
  0x33   : > { %s172_s18 = scalar_lea.vmem [#allocation7], %s552_s3  ;;  %s169_s30 = scalar_lea.sflag [#allocation8], %s877_s25 }
  0x34   : > { %s1079_s29 = scalar_select %p926_p7, 1, 0 }
  0x35   : > { %s183_s19 = sshll.u32 %s172_s18, 4  ;;  %s674_s4 = scalar_lea.hbm %s935_s16, 32  ;;  %s184_s19 = int_to_ptr.vmem [resolvable:$true] %s183_s19 }
  0x36   : > { %p675_p9 = scmp.ne.s32.totalorder %s935_s16, %s674_s4  ;;  %s679_s26 = scalar_lea.hbm %s1068_s1, 64 }
  0x37   : > { %p680_p3 = scmp.lt.u32.totalorder %s935_s16, %s1068_s1  ;;  %p681_p6 = scmp.lt.u32.totalorder %s679_s26, %s674_s4 }
  0x38   : > { %p677_p11 = pnand %p675_p9, %p646_p5  ;;  %p683_p10 = scmp.lt.u32.totalorder %s674_s4, %s935_s16 }
  0x39   : > { %p682_p4 = por %p681_p6, %p680_p3 }
  0x3a   : > { %p678_p13 = pneg %p677_p11 }
  0x3b   : > { %p684_p12 = por %p683_p10, %p682_p4 }
  0x3d   : > { %p685_p1 = pnand %p684_p12, %p678_p13 }
  0x3f   : > { %688 = shalt.err (!%p685_p1)
}
  0x40   : > { %s689_s25 = scalar_lea.vmem %s184_s19, 32  ;;  %s793_s3 = smov [#allocation7]  }
  0x41   : > { %p690_p2 = scmp.ne.s32.totalorder %s184_s19, %s689_s25  ;;  %s694_s7 = sshll.u32 %s793_s3, 4  ;;  %s695_s7 = int_to_ptr.vmem [resolvable:$false] %s694_s7 }
  0x42   : > { %s696_s8 = scalar_lea.vmem %s695_s7, 64  ;;  %p697_p8 = scmp.lt.s32.totalorder %s184_s19, %s695_s7 }
  0x43   : > { %p692_p9 = pnand %p690_p2, %p646_p5  ;;  %p698_p7 = scmp.lt.s32.totalorder %s696_s8, %s689_s25 }
  0x45   : > { %p693_p11 = pneg %p692_p9  ;;  %p699_p3 = por %p698_p7, %p697_p8 }
  0x47   : > { %p700_p6 = pnand %p699_p3, %p693_p11 }
  0x49   : > { %703 = shalt.err (!%p700_p6)
}
  0x4a   : > { %580 = dma.hbm_to_vmem [thread:$0]  (!%p890_p0), %s935_s16, 32, %s184_s19, %s169_s30  }
  0x4b   : > { %p1080_p13 = scmp.ne.s32.totalorder %s1079_s29, 0 }
  0x4c   : > { %s960_s15 = sand.u32 (!%p1080_p13), 1, %s774_s10   ;;  %p1081_p5 = scmp.ne.s32.totalorder (!%p1080_p13), %s1073_s21, 0 }
  0x4d   : > { %192 = sbr.rel (%p1080_p13) target bundleno = 400 (0x190), region = 28  ;;  %s556_s18 = sshll.u32 (!%p1080_p13), %s960_s15, 3 }
  0x4e   : > { %s195_s4 = scalar_lea.sflag (!%p1080_p13), [#allocation5], %s960_s15  ;;  %s198_s6 = scalar_lea.vmem (!%p1080_p13), [#allocation4], %s556_s18 }
  0x54   : > { %757 = dma.done.wait (%p1081_p5), %s195_s4, 128  }
  0x55   : > { %759 = vsyncadd (%p1081_p5), %s195_s4, 4294967168  ;;  %s557_s5 = sshll.u32 %s960_s15, 1  ;;  %s204_s29 = scalar_lea.sflag [#allocation8], %s960_s15 }
  0x56   : > { %s207_s16 = scalar_lea.vmem [#allocation7], %s557_s5 }
  0x57   : > { %761 = dma.done.wait (%p1081_p5), %s204_s29, 32  }
  0x58   : > { %763 = vsyncadd (%p1081_p5), %s204_s29, 4294967264  ;;  %v241_v0 = vlaneseq  ;;  %v794_v2 = vmov 0.0   ;;  %vm252_vm1 = vcmask 1043456   ;;  %v247_v3 = vld [vmem:[%s198_s6] sm:$0xff]  ;;  %v248_v4 = vld [vmem:[%s207_s16] sm:$0x3] }
  0x59   : > { %v250_v5 = vcombine.high %v247_v3, %v247_v3  ;;  %v253_v6 = vsel %vm252_vm1, %v247_v3, -inf  ;;  %vm327_vm2 = vcmp.ge.s32.totalorder %v248_v4, 0  ;;  %vm328_vm3 = vcmp.lt.s32.totalorder %v248_v4, 4  ;;  %s559_s21 = sshll.u32 %s782_s12, 4  ;;  %s231_s30 = scalar_lea.vmem [#allocation9], %s960_s15 }
  0x5a   : > { %vm975_vm0 = vcmp.lt.s32.totalorder %v241_v0, 256  ;;  %v254_v7 = vrot.slane %v253_v6, 4  ;;  %vm985_vm4 = vmand %vm327_vm2, %vm328_vm3  ;;  %v298_v25 = vshrl.u32 %v241_v0, 7  ;;  %v795_v62 = vmov 1966171168   ;;  %s436_s20 = sshll.u32 %s231_s30, 4  ;;  %s1018_s25 = scalar_lea.hbm %s1069_s2, %s559_s21  ;;  %s1020_s20 = int_to_ptr.vmem [resolvable:$true] %s436_s20 }
  0x5b   : > { %245 = vst.msk [vmem:[#allocation2] sm:$0x3] %vm975_vm0, %v794_v2  ;;  %246 = vst.msk [vmem:[#allocation3] sm:$0x3] %vm975_vm0, %v794_v2  ;;  %v260_v8 = vsel %vm252_vm1, %v250_v5, -inf  ;;  %v558_v13 = vsel %vm985_vm4, 1.0, %v794_v2  ;;  %v335_v63 = vunpack.c.l.s4 %v795_v62 }
  0x5c   : > { %v255_v9 = vmax.f32 %v253_v6, %v254_v7  ;;  %v261_v10 = vrot.slane %v260_v8, 4  ;;  %v994_v28 = vsub.s32 0, %v298_v25  ;;  %v996_v29 = vsub.s32 1, %v298_v25  ;;  %s423_s12 = scalar_lea.sflag [#allocation6], %s960_s15  ;;  %s704_s3 = scalar_lea.vmem %s1020_s20, 16 }
  0x5d   : > { %vm376_vm7 = vcmask 1040384   ;;  %p705_p8 = scmp.ne.s32.totalorder %s1020_s20, %s704_s3  ;;  %p1086_p0 = scmp.ne.s32.totalorder %s1074_s22, 0 }
  0x5e   : > { %v256_v14 = vrot.slane %v255_v9, 2  ;;  %v262_v15 = vmax.f32 %v260_v8, %v261_v10  ;;  %v302_v30 = vrot.slane %v248_v4, %v994_v28  ;;  %v306_v31 = vrot.slane %v248_v4, %v996_v29  ;;  %s796_s7 = smov [#allocation9]  }
  0x5f   : > { %p706_p7 = pnand %p705_p8, %p1086_p0  ;;  %s708_s8 = sshll.u32 %s796_s7, 4  ;;  %s709_s8 = int_to_ptr.vmem [resolvable:$false] %s708_s8 }
  0x60   : > { %v257_v17 = vmax.f32 %v255_v9, %v256_v14  ;;  %v263_v18 = vrot.slane %v262_v15, 2  ;;  %vm307_vm5 = vcmp.eq.s32.totalorder %v298_v25, %v302_v30  ;;  %vm308_vm6 = vcmp.eq.s32.totalorder %v298_v25, %v306_v31  ;;  %s710_s18 = scalar_lea.vmem %s709_s8, 32  ;;  %p711_p10 = scmp.lt.s32.totalorder %s1020_s20, %s709_s8 }
  0x61   : > { %v309_v32 = vsel %vm307_vm5, %v247_v3, 0.0  ;;  %v310_v36 = vsel %vm308_vm6, %v250_v5, 0.0  ;;  %v336_v9 = vunpack.c.0.s8 %v335_v63  ;;  %p707_p4 = pneg %p706_p7  ;;  %p712_p12 = scmp.lt.s32.totalorder %s710_s18, %s704_s3 }
  0x62   : > { %v356_v12 = vld [vmem:[#allocation3] sm:$0x3]  ;;  %v258_v19 = vrot.slane %v257_v17, 1  ;;  %v264_v20 = vmax.f32 %v262_v15, %v263_v18  ;;  %v311_v38 = vsel %vm252_vm1, %v309_v32, 0.0  ;;  %v318_v42 = vsel %vm252_vm1, %v310_v36, 0.0 }
  0x63   : > { %v359_v16 = vadd.f32 %v558_v13, %v356_v12  ;;  %v312_v43 = vrot.slane %v311_v38, 4  ;;  %v319_v46 = vrot.slane %v318_v42, 4  ;;  %v339_v14 = vsub.s32 %v336_v9, %v298_v25  ;;  %p713_p1 = por %p712_p12, %p711_p10 }
  0x64   : > { %v259_v21 = vmax.f32 %v257_v17, %v258_v19  ;;  %v265_v22 = vrot.slane %v264_v20, 1  ;;  %v330_v17 = vld [vmem:[#allocation2] sm:$0x3] }
  0x65   : > { %360 = vst.msk [vmem:[#allocation3] sm:$0x3] %vm975_vm0, %v359_v16  ;;  %v313_v49 = vadd.f32 %v312_v43, %v311_v38  ;;  %v320_v52 = vadd.f32 %v319_v46, %v318_v42  ;;  %p714_p2 = pnand %p713_p1, %p707_p4 }
  0x66   : > { %v266_v23 = vmax.f32 %v264_v20, %v265_v22 }
  0x67   : > { %v314_v55 = vrot.slane %v313_v49, 2  ;;  %v321_v57 = vrot.slane %v320_v52, 2 }
  0x68   : > { %v269_v24 = vcombine.low %v259_v21, %v266_v23 }
  0x69   : > { %v315_v58 = vadd.f32 %v314_v55, %v313_v49  ;;  %v322_v59 = vadd.f32 %v321_v57, %v320_v52 }
  0x6a   : > { %v271_v26 = vsub.f32 %v247_v3, %v269_v24 }
  0x6b   : > { %v316_v60 = vrot.slane %v315_v58, 1  ;;  %v323_v61 = vrot.slane %v322_v59, 1 }
  0x6c   : > { %v272_v27 = vmul.f32 1.442695, %v271_v26  ;;  %v389_v22 = vld [vmem:[#allocation3] sm:$0x3] }
  0x6d   : > { %v317_v4 = vadd.f32 %v316_v60, %v315_v58  ;;  %v324_v8 = vadd.f32 %v323_v61, %v322_v59  ;;  %v398_v24 = vrot.slane %v389_v22, %v996_v29 }
  0x6e   : > { %638 = vpow2.f32 %v272_v27 }
  0x6f   : > { %v402_v11 = vsel %vm376_vm7, %v398_v24, 0.0 }
  0x78   : > { %v639_v33 = vpop.eup %638 }
  0x79   : > { %v275_v34 = vcombine.high %v639_v33, %v639_v33  ;;  %v277_v35 = vsel %vm252_vm1, %v639_v33, 0.0 }
  0x7a   : > { %v278_v37 = vrot.slane %v277_v35, 4 }
  0x7b   : > { %v284_v39 = vsel %vm252_vm1, %v275_v34, 0.0 }
  0x7c   : > { %v279_v40 = vadd.f32 %v278_v37, %v277_v35  ;;  %v285_v41 = vrot.slane %v284_v39, 4 }
  0x7e   : > { %v280_v44 = vrot.slane %v279_v40, 2  ;;  %v286_v45 = vadd.f32 %v285_v41, %v284_v39 }
  0x80   : > { %v281_v47 = vadd.f32 %v280_v44, %v279_v40  ;;  %v287_v48 = vrot.slane %v286_v45, 2 }
  0x82   : > { %v282_v50 = vrot.slane %v281_v47, 1  ;;  %v288_v51 = vadd.f32 %v287_v48, %v286_v45  ;;  %v414_v45 = vand.u32 127, %v241_v0 }
  0x84   : > { %v283_v53 = vadd.f32 %v282_v50, %v281_v47  ;;  %v289_v54 = vrot.slane %v288_v51, 1  ;;  %vm416_vm8 = vcmp.eq.s32.totalorder %v414_v45, 1  ;;  %vm415_vm9 = vcmp.eq.s32.totalorder %v414_v45, 0 }
  0x86   : > { %v290_v56 = vadd.f32 %v289_v54, %v288_v51  ;;  %640 = vlog2.f32 %v283_v53 }
  0x88   : > { %642 = vlog2.f32 %v290_v56 }
  0x90   : > { %v641_v2 = vpop.eup %640 }
  0x91   : > { %v292_v3 = vmul.f32 0.6931472, %v641_v2 }
  0x92   : > { %v643_v5 = vpop.eup %642 }
  0x93   : > { %v294_v6 = vmul.f32 0.6931472, %v643_v5  ;;  %v295_v7 = vadd.f32 %v292_v3, %v259_v21  ;;  %v394_v21 = vrot.slane %v389_v22, %v994_v28 }
  0x95   : > { %v296_v10 = vadd.f32 %v294_v6, %v266_v23  ;;  %v325_v12 = vsub.f32 %v295_v7, %v317_v4  ;;  %v401_v31 = vsel %vm376_vm7, %v394_v21, 0.0 }
  0x96   : > { %v403_v33 = vadd.f32 %v402_v11, %v401_v31 }
  0x97   : > { %v326_v13 = vsub.f32 %v296_v10, %v324_v8 }
  0x99   : > { %v333_v15 = vcombine.low %v325_v12, %v326_v13 }
  0x9b   : > { %v340_v16 = vrot.slane %v333_v15, %v339_v14 }
  0x9d   : > { %v347_v18 = vrot.slane %v340_v16, %v339_v14 }
  0x9f   : > { %v349_v19 = vsel %vm985_vm4, %v347_v18, 0.0 }
  0xa0   : > { %v350_v20 = vadd.f32 %v349_v19, %v330_v17 }
  0xa2   : > { %355 = vst.msk [vmem:[#allocation2] sm:$0x3] %vm975_vm0, %v350_v20 }
  0xa9   : > { %v364_v23 = vld [vmem:[#allocation2] sm:$0x3] }
  0xaa   : > { %v369_v25 = vrot.slane %v364_v23, %v994_v28  ;;  %v373_v26 = vrot.slane %v364_v23, %v996_v29 }
  0xac   : > { %v377_v27 = vsel %vm376_vm7, %v369_v25, 0.0  ;;  %v378_v30 = vsel %vm376_vm7, %v373_v26, 0.0 }
  0xad   : > { %v379_v32 = vadd.f32 %v378_v30, %v377_v27 }
  0xaf   : > { %380 = vadd.xlane.f32.xlu0 %v379_v32 }
  0xb3   : > { %404 = vadd.xlane.f32.xlu0 %v403_v33 }
 0x13c   : > { %v381_v1 = vpop.xlane.xlu0 %380 }
 0x13d   : > { %v382_v34 = vrot.slane %v381_v1, 4 }
 0x13f   : > { %v383_v35 = vadd.f32 %v382_v34, %v381_v1 }
 0x140   : > { %v405_v36 = vpop.xlane.xlu0 %404 }
 0x141   : > { %v384_v37 = vrot.slane %v383_v35, 2  ;;  %v406_v38 = vrot.slane %v405_v36, 4 }
 0x143   : > { %v407_v39 = vadd.f32 %v406_v38, %v405_v36  ;;  %v385_v28 = vadd.f32 %v384_v37, %v383_v35 }
 0x145   : > { %v408_v40 = vrot.slane %v407_v39, 2  ;;  %v386_v29 = vrot.slane %v385_v28, 1 }
 0x147   : > { %v409_v41 = vadd.f32 %v408_v40, %v407_v39  ;;  %v387_v42 = vadd.f32 %v386_v29, %v385_v28 }
 0x149   : > { %564 = vpush %v387_v42  ;;  %v410_v43 = vrot.slane %v409_v41, 1 }
 0x14b   : > { %v411_v44 = vadd.f32 %v410_v43, %v409_v41 }
 0x14d   : > { %566 = vpush %v411_v44 }
 0x17a   : > { %s565_s19 = spop %564 }
 0x17b   : > { %v419_v47 = vstv %s565_s19 }
 0x17e   : > { %s567_s26 = spop %566 }
 0x17f   : > { %v417_v46 = vstv %s567_s26 }
 0x180   : > { %v418_v48 = vsel %vm416_vm8, %v417_v46, 0.0 }
 0x181   : > { %v420_v0 = vsel %vm415_vm9, %v419_v47, %v418_v48 }
 0x182   : > { %421 = vst [vmem:[%s231_s30] sm:$0x1] %v420_v0 }
 0x183   : > { %717 = shalt.err (!%p714_p2)
}
 0x184   : > { %s718_s15 = scalar_lea.hbm %s1018_s25, 16  ;;  %s722_s5 = scalar_lea.hbm %s1069_s2, 32 }
 0x185   : > { %p719_p9 = scmp.ne.s32.totalorder %s1018_s25, %s718_s15  ;;  %p723_p6 = scmp.lt.u32.totalorder %s1018_s25, %s1069_s2 }
 0x186   : > { %p724_p13 = scmp.lt.u32.totalorder %s722_s5, %s718_s15  ;;  %p726_p8 = scmp.lt.u32.totalorder %s718_s15, %s1018_s25 }
 0x187   : > { %p720_p11 = pnand %p719_p9, %p1086_p0 }
 0x188   : > { %p725_p5 = por %p724_p13, %p723_p6 }
 0x189   : > { %p721_p3 = pneg %p720_p11 }
 0x18a   : > { %p727_p7 = por %p726_p8, %p725_p5 }
 0x18c   : > { %p728_p4 = pnand %p727_p7, %p721_p3 }
 0x18e   : > { %731 = shalt.err (!%p728_p4)
}
 0x18f   : > { %572 = dma.vmem_to_hbm [thread:$0]  (%p1086_p0), %s1020_s20, 16, %s1018_s25, %s423_s12  }
 0x190 PF: > { %s448_s21 = sand.u32 1, %s770_s9   ;;  %p1087_p10 = scmp.ne.s32.totalorder %s1075_s24, 0 }
 0x191   : > { %p1088_p12 = scmp.ge.s32.totalorder %s790_s14, 2  ;;  %s449_s19 = scalar_lea.sflag [#allocation6], %s448_s21 }
 0x193   : > { %p582_p1 = pnand %p1088_p12, %p1087_p10 }
 0x195   : > { %765 = dma.done.wait (!%p582_p1), %s449_s19, 16  }
 0x196   : > { %767 = vsyncadd (!%p582_p1), %s449_s19, 4294967280  ;;  %s21_s14 = sadd.s32 1, %s790_s14   ;;  %s1089_s9 = smov %s774_s10 }
 0x197   : > { %p18_p2 = scmp.ge.s32.totalorder %s21_s14, 4   ;;  %s1090_s10 = smov %s778_s11 }
 0x198   : > { %s1091_s11 = smov %s868_s23  ;;  %s1092_s12 = smov %s786_s13 }
 0x199   : > { %s1093_s13 = smov %s1095_s17  ;;  %20 = sbr.rel (!%p18_p2) target bundleno = 8 (0x8), region = 94 }
 0x1a0   :  { %453 = vsyncpa [#allocation5], 1 }
 0x1a1   :  { %455 = vsyncpa [#allocation5 + $0x1], 1 }
 0x1a2   :  { %456 = vsyncpa [#allocation8], 1 }
 0x1a3   :  { %458 = vsyncpa [#allocation8 + $0x1], 1 }
 0x1a4   :  { %459 = vsyncpa [#allocation6], 1 }
 0x1a5   :  { %461 = vsyncpa [#allocation6 + $0x1], 1 }

</bundles_post_ra>
